<compile_context>
chip_gen: v5e
topology: v5e:2x2
jax: 0.10.0
libtpu: 0.0.40
codegen_flags: <defaults>
</compile_context>

<pallas_src>
import jax
import jax.numpy as jnp
from jax.experimental import pallas as pl
from jax.experimental.pallas import tpu as pltpu


def _mish_kernel(x_ref, o_ref):
    x = x_ref[...].astype(jnp.float32)
    # Single transcendental: m = exp(-|x|); tanh(softplus(x)) is a rational
    # function of m on each half-line.
    m = jnp.exp(-jnp.abs(x))
    m2 = m * m
    t = 2.0 * m
    pos = x > 0
    num = jnp.where(pos, 1.0 + t, m2 + t)
    den = num + jnp.where(pos, 2.0 * m2, 2.0)
    o_ref[...] = (x * (num / den)).astype(o_ref.dtype)


def _cdiv(a, b):
    return -(-a // b)


def _round_up(a, b):
    return _cdiv(a, b) * b


def mish(x: jax.Array) -> jax.Array:
    """Elementwise Mish = x * tanh(softplus(x)), computed in f32."""
    orig_shape = x.shape
    orig_dtype = x.dtype

    flat = x.reshape(-1)
    n = flat.shape[0]
    if n == 0:
        return x

    itemsize = jnp.dtype(orig_dtype).itemsize

    # Widest lane dim that divides n -> zero-copy reshape; otherwise fall back
    # to 128 lanes with a tiny (<128 element) zero pad.
    lanes = next((c for c in (1024, 512, 256, 128) if n % c == 0), 128)
    n_pad = (-n) % lanes
    if n_pad:
        flat = jnp.concatenate([flat, jnp.zeros((n_pad,), dtype=orig_dtype)])
    rows = (n + n_pad) // lanes
    x2d = flat.reshape(rows, lanes)

    # ~2 MiB blocks: large enough to sit near the HBM roofline, small enough
    # (x2 double-buffer, in+out, plus f32 temporaries) for v5e/v6e/v7x VMEM.
    TARGET_BLOCK_BYTES = 2 * 1024 * 1024
    target_rows = max(8, (TARGET_BLOCK_BYTES // (lanes * itemsize)) // 8 * 8)
    if rows <= target_rows:
        # Single block spanning the whole slab: block_shape equal to the full
        # array dims is always legal, even when rows % 8 != 0.
        block_rows = rows
    else:
        # Split as evenly as possible (keeps multiple grid steps busy on
        # v7x's two TensorCores) while staying at/below the target size.
        n_steps = _cdiv(rows, target_rows)
        block_rows = min(target_rows, _round_up(_cdiv(rows, n_steps), 8))
    grid = (_cdiv(rows, block_rows),)

    cost = pl.CostEstimate(
        flops=10 * n,
        transcendentals=2 * n,            # exp + the divide's reciprocal
        bytes_accessed=2 * n * itemsize,  # one read + one write pass
    )

    out2d = pl.pallas_call(
        _mish_kernel,
        out_shape=jax.ShapeDtypeStruct((rows, lanes), orig_dtype),
        grid_spec=pltpu.PrefetchScalarGridSpec(
            num_scalar_prefetch=0,
            grid=grid,
            in_specs=[pl.BlockSpec((block_rows, lanes), lambda i: (i, 0))],
            out_specs=pl.BlockSpec((block_rows, lanes), lambda i: (i, 0)),
        ),
        compiler_params=pltpu.CompilerParams(
            dimension_semantics=("parallel",),
            vmem_limit_bytes=48 * 1024 * 1024,
        ),
        cost_estimate=cost,
    )(x2d)

    out = out2d.reshape(-1)
    if n_pad:
        out = out[:n]
    return out.reshape(orig_shape)


def _mish_ref(x):
    xf = x.astype(jnp.float32)
    return (xf * jnp.tanh(jax.nn.softplus(xf))).astype(x.dtype)


if __name__ == "__main__":
    key = jax.random.PRNGKey(0)
    # NCHW input, small shape consistent with a conv-net activation.
    x = jax.random.normal(key, (2, 4, 16, 16), dtype=jnp.float32) * 3.0

    y = mish(x)
    jax.block_until_ready(y)

    y_ref = _mish_ref(x)
    assert y.shape == x.shape and y.dtype == x.dtype
    assert jnp.allclose(y, y_ref, atol=1e-5, rtol=1e-5)

    # Also exercise a ragged (non-multiple-of-128) shape / pad path.
    x2 = jax.random.normal(jax.random.PRNGKey(1), (3, 5, 31, 17),
                           dtype=jnp.float32) * 4.0
    y2 = mish(x2)
    jax.block_until_ready(y2)
    assert jnp.allclose(y2, _mish_ref(x2), atol=1e-5, rtol=1e-5)

    print("KERNEL_OK")
</pallas_src>

<mosaic_0001>
module attributes {stable_mosaic.version = 11 : i64} {
  func.func @_mish_kernel(%arg0: i32, %arg1: memref<2x1024xf32, #tpu.memory_space<vmem>>, %arg2: memref<2x1024xf32, #tpu.memory_space<vmem>>) attributes {dimension_semantics = [#tpu.dimension_semantics<parallel>], iteration_bounds = array<i64: 1>, scalar_prefetch = 0 : i64, scratch_operands = 0 : i64, tpu.core_type = #tpu.core_type<tc>, window_params = [{transform_indices = @transform_0, window_bounds = array<i64: 2, 1024>}, {transform_indices = @transform_1, window_bounds = array<i64: 2, 1024>}]} {
    %c0 = arith.constant 0 : index
    %c0_0 = arith.constant 0 : index
    %0 = vector.load %arg1[%c0, %c0_0] : memref<2x1024xf32, #tpu.memory_space<vmem>>, vector<2x1024xf32>
    %1 = math.absf %0 : vector<2x1024xf32>
    %cst = arith.constant 0.000000e+00 : f32
    %2 = vector.broadcast %cst : f32 to vector<2x1024xf32>
    %3 = arith.subf %2, %1 : vector<2x1024xf32>
    %4 = math.exp %3 : vector<2x1024xf32>
    %5 = arith.mulf %4, %4 : vector<2x1024xf32>
    %cst_1 = arith.constant 2.000000e+00 : f32
    %6 = vector.broadcast %cst_1 : f32 to vector<2x1024xf32>
    %7 = arith.mulf %6, %4 : vector<2x1024xf32>
    %cst_2 = arith.constant 0.000000e+00 : f32
    %8 = vector.broadcast %cst_2 : f32 to vector<2x1024xf32>
    %9 = arith.cmpf ogt, %0, %8 : vector<2x1024xf32>
    %cst_3 = arith.constant 1.000000e+00 : f32
    %10 = vector.broadcast %cst_3 : f32 to vector<2x1024xf32>
    %11 = arith.addf %10, %7 : vector<2x1024xf32>
    %12 = arith.addf %5, %7 : vector<2x1024xf32>
    %13 = arith.select %9, %11, %12 : vector<2x1024xi1>, vector<2x1024xf32>
    %cst_4 = arith.constant 2.000000e+00 : f32
    %14 = vector.broadcast %cst_4 : f32 to vector<2x1024xf32>
    %15 = arith.mulf %14, %5 : vector<2x1024xf32>
    %cst_5 = arith.constant 2.000000e+00 : f32
    %16 = vector.broadcast %cst_5 : f32 to vector<2x1024xf32>
    %17 = arith.select %9, %15, %16 : vector<2x1024xi1>, vector<2x1024xf32>
    %18 = arith.addf %13, %17 : vector<2x1024xf32>
    %19 = arith.divf %13, %18 : vector<2x1024xf32>
    %20 = arith.mulf %0, %19 : vector<2x1024xf32>
    %c0_6 = arith.constant 0 : index
    %c0_7 = arith.constant 0 : index
    %21 = vector.load %arg2[%c0_6, %c0_7] : memref<2x1024xf32, #tpu.memory_space<vmem>>, vector<2x1024xf32>
    tpu.vector_store %arg2[%c0_6, %c0_7], %20 {strides = array<i32>} : memref<2x1024xf32, #tpu.memory_space<vmem>>, vector<2x1024xf32>,
    return
  }
  func.func @transform_0(%arg0: i32) -> (i32, i32) {
    %c0_i32 = arith.constant 0 : i32
    %c0_i32_0 = arith.constant 0 : i32
    return %arg0, %c0_i32 : i32, i32
  }
  func.func @transform_1(%arg0: i32) -> (i32, i32) {
    %c0_i32 = arith.constant 0 : i32
    %c0_i32_0 = arith.constant 0 : i32
    return %arg0, %c0_i32 : i32, i32
  }
}

</mosaic_0001>

<bundles_post_ra>
// kernel: tpu_custom_call.1
= control target key start
LH: loop header
LB: loop body
LE: loop exit
PB: predicated region body
PF: predicated region fallthrough
CT: control target
= control target key end

     0   :  { %6 = vsyncpa [#allocation3], 0  ;;  %s192_s0 = inlined_call_operand.hbm [shape: f32[2,1024], index: 0, kind: input, shape index: {}]   ;;  %s193_s1 = inlined_call_operand.hbm [shape: f32[2,1024], index: 1, kind: output, shape index: {}]  }
   0x1   :  { %7 = vsyncpa [#allocation4], 0  ;;  %s13_s8 = sshll.u32 %s192_s0, 4  ;;  %s164_s9 = smov [#allocation2]   ;;  %s14_s8 = int_to_ptr.hbm [resolvable:$true] %s13_s8 }
   0x2   :  { %s15_s10 = sshll.u32 %s164_s9, 4  ;;  %s16_s10 = int_to_ptr.vmem [resolvable:$true] %s15_s10 }
   0x3   :  { %18 = dma.hbm_to_vmem [thread:$0]  %s14_s8, 256, %s16_s10, [#allocation3]  }
   0x4   :  { %160 = dma.done.wait [#allocation3], 256  }
   0x5   :  { %161 = vsyncadd [#allocation3], 4294967040  ;;  %v179_v0 = vld [vmem:[#allocation2] sm:$0xff]  ;;  %v181_v1 = vld [vmem:[#allocation2 + $0x8] sm:$0xff]  ;;  %s165_s0 = smov [#allocation5]   ;;  %s92_s14 = sshll.u32 %s193_s1, 4  ;;  %s93_s14 = int_to_ptr.hbm [resolvable:$true] %s92_s14 }
   0x6   :  { %v25_v2 = vand.u32 2147483647, %v179_v0  ;;  %v26_v3 = vand.u32 2147483647, %v181_v1  ;;  %vm37_vm0 = vcmp.gt.f32.partialorder %v179_v0, 0.0  ;;  %vm38_vm1 = vcmp.gt.f32.partialorder %v181_v1, 0.0 }
   0x7   :  { %s90_s11 = sshll.u32 %s165_s0, 4  ;;  %s91_s11 = int_to_ptr.vmem [resolvable:$true] %s90_s11 }
   0x8   :  { %v27_v4 = vsub.f32 0.0, %v25_v2  ;;  %v28_v5 = vsub.f32 0.0, %v26_v3 }
   0xa   :  { %v29_v6 = vmul.f32 1.442695, %v27_v4  ;;  %v31_v7 = vmul.f32 1.442695, %v28_v5 }
   0xc   :  { %104 = vpow2.f32 %v29_v6 }
   0xd   :  { %106 = vpow2.f32 %v31_v7 }
  0x12   :  { %v105_v8 = vpop.eup %104 }
  0x13   :  { %v107_v9 = vpop.eup %106  ;;  %v33_v10 = vmul.f32 %v105_v8, %v105_v8  ;;  %v35_v11 = vmul.f32 2.0, %v105_v8 }
  0x14   :  { %v34_v12 = vmul.f32 %v107_v9, %v107_v9  ;;  %v36_v13 = vmul.f32 2.0, %v107_v9 }
  0x15   :  { %v39_v14 = vadd.f32 1.0, %v35_v11  ;;  %v41_v15 = vadd.f32 %v35_v11, %v33_v10  ;;  %v45_v16 = vmul.f32 2.0, %v33_v10 }
  0x16   :  { %v40_v17 = vadd.f32 1.0, %v36_v13  ;;  %v42_v18 = vadd.f32 %v36_v13, %v34_v12  ;;  %v46_v19 = vmul.f32 2.0, %v34_v12 }
  0x17   :  { %v43_v20 = vsel %vm37_vm0, %v39_v14, %v41_v15  ;;  %v47_v21 = vsel %vm37_vm0, %v45_v16, 2.0 }
  0x18   :  { %v49_v22 = vadd.f32 %v47_v21, %v43_v20  ;;  %v44_v23 = vsel %vm38_vm1, %v40_v17, %v42_v18  ;;  %v48_v24 = vsel %vm38_vm1, %v46_v19, 2.0 }
  0x19   :  { %v50_v25 = vadd.f32 %v48_v24, %v44_v23 }
  0x1a   :  { %108 = vrcp.f32 %v49_v22  ;;  %vm56_vm2 = vweird.f32 %v49_v22  ;;  %v62_v29 = vand.u32 2147483648, %v49_v22  ;;  %v60_v32 = vand.u32 2147483647, %v49_v22 }
  0x1b   :  { %110 = vrcp.f32 %v50_v25  ;;  %v77_v33 = vand.u32 2147483648, %v50_v25  ;;  %vm71_vm4 = vweird.f32 %v50_v25  ;;  %v75_v35 = vand.u32 2147483647, %v50_v25 }
  0x1c   :  { %v63_v37 = vor.u32 1.1754944e-38, %v62_v29  ;;  %vm61_vm7 = vcmp.eq.f32.partialorder %v60_v32, 8.507059e+37 }
  0x1d   :  { %v78_v40 = vor.u32 1.1754944e-38, %v77_v33  ;;  %vm76_vm9 = vcmp.eq.f32.partialorder %v75_v35, 8.507059e+37 }
  0x20   :  { %v109_v26 = vpop.eup %108 }
  0x21   :  { %v111_v27 = vpop.eup %110  ;;  %v52_v28 = vmul.f32 %v109_v26, %v49_v22  ;;  %vm57_vm3 = vweird.f32 %v109_v26 }
  0x22   :  { %v67_v30 = vmul.f32 %v111_v27, %v50_v25  ;;  %vm72_vm5 = vweird.f32 %v111_v27  ;;  %vm58_vm6 = vmor %vm56_vm2, %vm57_vm3 }
  0x23   :  { %v53_v31 = vsub.f32 1.0, %v52_v28  ;;  %vm73_vm8 = vmor %vm71_vm4, %vm72_vm5 }
  0x24   :  { %v68_v34 = vsub.f32 1.0, %v67_v30 }
  0x25   :  { %v54_v36 = vmul.f32 %v109_v26, %v53_v31 }
  0x26   :  { %v69_v38 = vmul.f32 %v111_v27, %v68_v34 }
  0x27   :  { %v55_v39 = vadd.f32 %v109_v26, %v54_v36 }
  0x28   :  { %v70_v41 = vadd.f32 %v111_v27, %v69_v38 }
  0x29   :  { %v59_v42 = vsel %vm58_vm6, %v109_v26, %v55_v39 }
  0x2a   :  { %v64_v43 = vsel %vm61_vm7, %v63_v37, %v59_v42  ;;  %v74_v44 = vsel %vm73_vm8, %v111_v27, %v70_v41 }
  0x2b   :  { %v65_v45 = vmul.f32 %v64_v43, %v43_v20  ;;  %v79_v46 = vsel %vm76_vm9, %v78_v40, %v74_v44 }
  0x2c   :  { %v80_v47 = vmul.f32 %v79_v46, %v44_v23 }
  0x2d   :  { %v81_v48 = vmul.f32 %v65_v45, %v179_v0 }
  0x2e   :  { %v82_v49 = vmul.f32 %v80_v47, %v181_v1 }
  0x2f   :  { %83 = vst [vmem:[#allocation5] sm:$0xff] %v81_v48 }
  0x30   :  { %84 = vst [vmem:[#allocation5 + $0x8] sm:$0xff] %v82_v49 }
  0x31   :  { %95 = dma.vmem_to_hbm [thread:$0]  %s91_s11, 256, %s93_s14, [#allocation4]  }
  0x32   :  { %162 = dma.done.wait [#allocation4], 256  }
  0x33   :  { %163 = vsyncadd [#allocation4], 4294967040 }
  0x34   :  { %100 = vsyncpa [#allocation3], 1 }
  0x35   :  { %101 = vsyncpa [#allocation4], 1 }

</bundles_post_ra>
